<compile_context>
chip_gen: v7x
topology: tpu7x:2x2x1
jax: 0.10.0
libtpu: 0.0.40
codegen_flags: <defaults>
</compile_context>

<pallas_src>
import jax
import jax.numpy as jnp
from jax.experimental import pallas as pl
from jax.experimental.pallas import tpu as pltpu


def _round_up(n, m):
    return ((n + m - 1) // m) * m


def _choose_batch_tile(B, D):
    """Pick the batch-tile row count from a VMEM byte budget."""
    # Approximate per-row VMEM footprint (bytes):
    #   double-buffered f32 x tile (2*4*D) + in-kernel bf16 x copy (2*D)
    #   + f32 h1 (128*4) + bf16 h1 (128*2) + f32 h2 (64*4)
    #   + double-buffered f32 output row (2*4)
    per_row = 2 * 4 * D + 2 * D + 128 * (4 + 2) + 64 * 4 + 2 * 4
    budget = 12 * 1024 * 1024  # fits v5e/v6e/v7x scoped-VMEM defaults, no override
    rows = max(8, budget // per_row)
    rows = min(rows, 1 << 14)
    # Give v7x's two TensorCores work even when the batch fits in one tile.
    if B > 8 and rows >= B:
        rows = pl.cdiv(B, 2)
    rows = min(rows, max(B, 8))
    if rows >= 128:
        rows = (rows // 128) * 128  # multiple of 128 -> unmasked lane-dense stores
    else:
        rows = _round_up(rows, 8)   # sublane multiple
    return rows


def _mlp_kernel(x_ref, w1_ref, b1_ref, w2_ref, b2_ref, w3_ref, b3_ref, o_ref):
    # In-kernel f32 -> bf16 cast of the streamed x tile (free on the VPU).
    x = x_ref[...].astype(jnp.bfloat16)

    # Layer 1: (tb, D) @ (D, 128) on the MXU (bf16 operands, f32 accumulate).
    h1 = jnp.dot(x, w1_ref[...], preferred_element_type=jnp.float32)
    h1 = jnp.maximum(h1 + b1_ref[...], 0.0)  # f32 epilogue (VPU)

    # Layer 2: (tb, 128) @ (128, 64) on the MXU.
    h2 = jnp.dot(h1.astype(jnp.bfloat16), w2_ref[...],
                 preferred_element_type=jnp.float32)
    h2 = jnp.maximum(h2 + b2_ref[...], 0.0)

    # Layer 3 (out_features == 1): compute lane-dense as (1,64) @ (tb,64)^T
    # (rhs-transposed contraction, f32 on the MXU) -> (1, tb) row.
    h3 = jax.lax.dot_general(
        w3_ref[...], h2,
        dimension_numbers=(((1,), (1,)), ((), ())),
        preferred_element_type=jnp.float32)
    h3 = h3 + b3_ref[...]                      # (1, tb) + (1, 1)

    o_ref[...] = h3[None].astype(o_ref.dtype)  # (1, 1, tb) lane-dense store


def simple_nn_forward(x, params):
    """x: (B, D) float32. params: w1(D,128), b1(1,128), w2(128,64), b2(1,64), w3(1,64), b3(1,1)."""
    w1 = params["w1"].astype(jnp.bfloat16)
    w2 = params["w2"].astype(jnp.bfloat16)
    b1 = params["b1"].astype(jnp.float32)
    b2 = params["b2"].astype(jnp.float32)
    w3 = params["w3"].astype(jnp.float32)  # layer-3 weight stays f32
    b3 = params["b3"].astype(jnp.float32)

    x = x.astype(jnp.float32)
    B, D = x.shape

    tb = _choose_batch_tile(B, D)
    num_tiles = pl.cdiv(B, tb)   # ragged last block: OOB reads unspecified, outputs sliced off
    grid = (num_tiles,)

    # Weights/biases: constant index_map -> DMA'd once, VMEM-resident across grid.
    resident = lambda a: pl.BlockSpec(a.shape, lambda i: (0, 0))

    flops = 2 * B * (D * 128 + 128 * 64 + 64)
    bytes_accessed = (
        x.size * 4 + B * 4                            # streamed f32 x + f32 output
        + w1.size * 2 + w2.size * 2                   # bf16 weights
        + (b1.size + b2.size + w3.size + b3.size) * 4 # f32 biases / w3
    )

    out = pl.pallas_call(
        _mlp_kernel,
        out_shape=jax.ShapeDtypeStruct((num_tiles, 1, tb), jnp.float32),
        grid=grid,
        in_specs=[
            pl.BlockSpec((tb, D), lambda i: (i, 0)),  # stream x over the batch
            resident(w1), resident(b1),
            resident(w2), resident(b2),
            resident(w3), resident(b3),
        ],
        out_specs=pl.BlockSpec((1, 1, tb), lambda i: (i, 0, 0)),
        compiler_params=pltpu.CompilerParams(
            # Batch axis shards across the two v7x TensorCores; harmless on v5e/v6e.
            dimension_semantics=("parallel",),
            # Working set is budgeted to fit the default scoped-VMEM limit on all
            # generations; for very wide D on v6e one could raise vmem_limit_bytes
            # instead of shrinking tb (do NOT port such a value to v7x's 64 MiB).
        ),
        cost_estimate=pl.CostEstimate(
            flops=flops, transcendentals=0, bytes_accessed=bytes_accessed),
    )(x, w1, b1, w2, b2, w3, b3)

    # (num_tiles, 1, tb) -> (B, 1); drops the unspecified ragged tail rows.
    return out.reshape(num_tiles * tb)[:B].reshape(B, 1)


def init_params(key, input_dim):
    """Deterministic init mirroring PyTorch Linear (w1/w2 stored as (in,out); w3 as (1,64))."""
    ks = jax.random.split(key, 6)

    def uniform(k, shape, fan_in):
        bound = 1.0 / jnp.sqrt(fan_in)
        return jax.random.uniform(k, shape, jnp.float32, -bound, bound)

    return {
        "w1": uniform(ks[0], (input_dim, 128), input_dim),
        "b1": uniform(ks[1], (1, 128), input_dim),
        "w2": uniform(ks[2], (128, 64), 128),
        "b2": uniform(ks[3], (1, 64), 128),
        "w3": uniform(ks[4], (1, 64), 64),
        "b3": uniform(ks[5], (1, 1), 64),
    }


def _reference(x, params):
    h = jnp.maximum(x @ params["w1"] + params["b1"], 0.0)
    h = jnp.maximum(h @ params["w2"] + params["b2"], 0.0)
    return jnp.sum(h * params["w3"], axis=-1, keepdims=True) + params["b3"]


if __name__ == "__main__":
    key = jax.random.PRNGKey(0)
    k_param, k_x1, k_x2 = jax.random.split(key, 3)

    batch, input_dim = 8, 32
    params = init_params(k_param, input_dim)

    # Single-tile case (grid = 1).
    x = jax.random.normal(k_x1, (batch, input_dim), jnp.float32)
    out = simple_nn_forward(x, params)
    jax.block_until_ready(out)
    ref = _reference(x, params)
    assert out.shape == (batch, 1)
    # bf16 MXU inputs -> looser tolerance vs the f32 reference.
    assert jnp.allclose(out, ref, atol=5e-2, rtol=5e-2)

    # Multi-block case: B=21 auto-tiles to tb=16 -> grid of 2 with a ragged
    # last block (exercises the pad-free cdiv grid and OOB-read masking).
    x2 = jax.random.normal(k_x2, (21, input_dim), jnp.float32)
    out2 = simple_nn_forward(x2, params)
    jax.block_until_ready(out2)
    ref2 = _reference(x2, params)
    assert out2.shape == (21, 1)
    assert jnp.allclose(out2, ref2, atol=5e-2, rtol=5e-2)

    print("KERNEL_OK")
</pallas_src>

<mosaic_0001>
module attributes {stable_mosaic.version = 11 : i64} {
  func.func @_mlp_kernel(%arg0: i32, %arg1: memref<8x32xf32, #tpu.memory_space<vmem>>, %arg2: memref<32x128xbf16, #tpu.memory_space<vmem>>, %arg3: memref<1x128xf32, #tpu.memory_space<vmem>>, %arg4: memref<128x64xbf16, #tpu.memory_space<vmem>>, %arg5: memref<1x64xf32, #tpu.memory_space<vmem>>, %arg6: memref<1x64xf32, #tpu.memory_space<vmem>>, %arg7: memref<1x1xf32, #tpu.memory_space<vmem>>, %arg8: memref<1x1x8xf32, #tpu.memory_space<vmem>>) attributes {dimension_semantics = [#tpu.dimension_semantics<parallel>], iteration_bounds = array<i64: 1>, scalar_prefetch = 0 : i64, scratch_operands = 0 : i64, tpu.core_type = #tpu.core_type<tc>, window_params = [{transform_indices = @transform_0, window_bounds = array<i64: 8, 32>}, {pipeline_mode = #tpu.pipeline_mode<synchronous>, transform_indices = @transform_1, window_bounds = array<i64: 32, 128>}, {pipeline_mode = #tpu.pipeline_mode<synchronous>, transform_indices = @transform_2, window_bounds = array<i64: 1, 128>}, {pipeline_mode = #tpu.pipeline_mode<synchronous>, transform_indices = @transform_3, window_bounds = array<i64: 128, 64>}, {pipeline_mode = #tpu.pipeline_mode<synchronous>, transform_indices = @transform_4, window_bounds = array<i64: 1, 64>}, {pipeline_mode = #tpu.pipeline_mode<synchronous>, transform_indices = @transform_5, window_bounds = array<i64: 1, 64>}, {pipeline_mode = #tpu.pipeline_mode<synchronous>, transform_indices = @transform_6, window_bounds = array<i64: 1, 1>}, {transform_indices = @transform_7, window_bounds = array<i64: 1, 1, 8>}]} {
    %c0 = arith.constant 0 : index
    %c0_0 = arith.constant 0 : index
    %0 = vector.load %arg1[%c0, %c0_0] : memref<8x32xf32, #tpu.memory_space<vmem>>, vector<8x32xf32>
    %1 = arith.truncf %0 : vector<8x32xf32> to vector<8x32xbf16>
    %c0_1 = arith.constant 0 : index
    %c0_2 = arith.constant 0 : index
    %2 = vector.load %arg2[%c0_1, %c0_2] : memref<32x128xbf16, #tpu.memory_space<vmem>>, vector<32x128xbf16>
    %cst = arith.constant dense<0.000000e+00> : vector<8x128xf32>
    %3 = tpu.matmul %1, %2, %cst {dimension_numbers = #tpu.dot_dimension_numbers<[1], [0], [0], [1], [0, 0, 1, 1], [], []>} : vector<8x32xbf16>, vector<32x128xbf16>, vector<8x128xf32> -> vector<8x128xf32>
    %c0_3 = arith.constant 0 : index
    %c0_4 = arith.constant 0 : index
    %4 = vector.load %arg3[%c0_3, %c0_4] : memref<1x128xf32, #tpu.memory_space<vmem>>, vector<1x128xf32>
    %5 = vector.broadcast %4 : vector<1x128xf32> to vector<8x128xf32>
    %6 = arith.addf %3, %5 : vector<8x128xf32>
    %cst_5 = arith.constant 0.000000e+00 : f32
    %7 = vector.broadcast %cst_5 : f32 to vector<8x128xf32>
    %8 = arith.maximumf %6, %7 : vector<8x128xf32>
    %9 = arith.truncf %8 : vector<8x128xf32> to vector<8x128xbf16>
    %c0_6 = arith.constant 0 : index
    %c0_7 = arith.constant 0 : index
    %10 = vector.load %arg4[%c0_6, %c0_7] : memref<128x64xbf16, #tpu.memory_space<vmem>>, vector<128x64xbf16>
    %cst_8 = arith.constant dense<0.000000e+00> : vector<8x64xf32>
    %11 = tpu.matmul %9, %10, %cst_8 {dimension_numbers = #tpu.dot_dimension_numbers<[1], [0], [0], [1], [0, 0, 1, 1], [], []>} : vector<8x128xbf16>, vector<128x64xbf16>, vector<8x64xf32> -> vector<8x64xf32>
    %c0_9 = arith.constant 0 : index
    %c0_10 = arith.constant 0 : index
    %12 = vector.load %arg5[%c0_9, %c0_10] : memref<1x64xf32, #tpu.memory_space<vmem>>, vector<1x64xf32>
    %13 = vector.broadcast %12 : vector<1x64xf32> to vector<8x64xf32>
    %14 = arith.addf %11, %13 : vector<8x64xf32>
    %cst_11 = arith.constant 0.000000e+00 : f32
    %15 = vector.broadcast %cst_11 : f32 to vector<8x64xf32>
    %16 = arith.maximumf %14, %15 : vector<8x64xf32>
    %c0_12 = arith.constant 0 : index
    %c0_13 = arith.constant 0 : index
    %17 = vector.load %arg6[%c0_12, %c0_13] : memref<1x64xf32, #tpu.memory_space<vmem>>, vector<1x64xf32>
    %cst_14 = arith.constant dense<0.000000e+00> : vector<1x8xf32>
    %18 = tpu.matmul %17, %16, %cst_14 {dimension_numbers = #tpu.dot_dimension_numbers<[1], [1], [0], [0], [0, 0, 1, 0], [], []>} : vector<1x64xf32>, vector<8x64xf32>, vector<1x8xf32> -> vector<1x8xf32>
    %c0_15 = arith.constant 0 : index
    %c0_16 = arith.constant 0 : index
    %19 = vector.load %arg7[%c0_15, %c0_16] : memref<1x1xf32, #tpu.memory_space<vmem>>, vector<1x1xf32>
    %20 = vector.broadcast %19 : vector<1x1xf32> to vector<1x8xf32>
    %21 = arith.addf %18, %20 : vector<1x8xf32>
    %22 = vector.shape_cast %21 : vector<1x8xf32> to vector<1x1x8xf32>
    %c0_17 = arith.constant 0 : index
    %c0_18 = arith.constant 0 : index
    %c0_19 = arith.constant 0 : index
    %23 = vector.load %arg8[%c0_17, %c0_18, %c0_19] : memref<1x1x8xf32, #tpu.memory_space<vmem>>, vector<1x1x8xf32>
    tpu.vector_store %arg8[%c0_17, %c0_18, %c0_19], %22 {strides = array<i32>} : memref<1x1x8xf32, #tpu.memory_space<vmem>>, vector<1x1x8xf32>,
    return
  }
  func.func @transform_0(%arg0: i32) -> (i32, i32) {
    %c0_i32 = arith.constant 0 : i32
    %c0_i32_0 = arith.constant 0 : i32
    return %arg0, %c0_i32 : i32, i32
  }
  func.func @transform_1(%arg0: i32) -> (i32, i32) {
    %c0_i32 = arith.constant 0 : i32
    %c0_i32_0 = arith.constant 0 : i32
    %c0_i32_1 = arith.constant 0 : i32
    return %c0_i32, %c0_i32_0 : i32, i32
  }
  func.func @transform_2(%arg0: i32) -> (i32, i32) {
    %c0_i32 = arith.constant 0 : i32
    %c0_i32_0 = arith.constant 0 : i32
    %c0_i32_1 = arith.constant 0 : i32
    return %c0_i32, %c0_i32_0 : i32, i32
  }
  func.func @transform_3(%arg0: i32) -> (i32, i32) {
    %c0_i32 = arith.constant 0 : i32
    %c0_i32_0 = arith.constant 0 : i32
    %c0_i32_1 = arith.constant 0 : i32
    return %c0_i32, %c0_i32_0 : i32, i32
  }
  func.func @transform_4(%arg0: i32) -> (i32, i32) {
    %c0_i32 = arith.constant 0 : i32
    %c0_i32_0 = arith.constant 0 : i32
    %c0_i32_1 = arith.constant 0 : i32
    return %c0_i32, %c0_i32_0 : i32, i32
  }
  func.func @transform_5(%arg0: i32) -> (i32, i32) {
    %c0_i32 = arith.constant 0 : i32
    %c0_i32_0 = arith.constant 0 : i32
    %c0_i32_1 = arith.constant 0 : i32
    return %c0_i32, %c0_i32_0 : i32, i32
  }
  func.func @transform_6(%arg0: i32) -> (i32, i32) {
    %c0_i32 = arith.constant 0 : i32
    %c0_i32_0 = arith.constant 0 : i32
    %c0_i32_1 = arith.constant 0 : i32
    return %c0_i32, %c0_i32_0 : i32, i32
  }
  func.func @transform_7(%arg0: i32) -> (i32, i32, i32) {
    %c0_i32 = arith.constant 0 : i32
    %c0_i32_0 = arith.constant 0 : i32
    %c0_i32_1 = arith.constant 0 : i32
    return %arg0, %c0_i32, %c0_i32_0 : i32, i32, i32
  }
}

</mosaic_0001>

<bundles_post_ra>
// kernel: tpu_custom_call.1
= control target key start
LH: loop header
LB: loop body
LE: loop exit
PB: predicated region body
PF: predicated region fallthrough
CT: control target
= control target key end

     0   :  { %s522_s0 = inlined_call_operand.vmem [shape: f32[8,32], index: 0, kind: input, shape index: {}]   ;;  %s523_s1 = inlined_call_operand.vmem [shape: bf16[32,128], index: 1, kind: input, shape index: {}]   ;;  %s524_s2 = inlined_call_operand.vmem [shape: f32[1,128], index: 2, kind: input, shape index: {}]   ;;  %s525_s3 = inlined_call_operand.vmem [shape: bf16[128,64], index: 3, kind: input, shape index: {}]   ;;  %s526_s4 = inlined_call_operand.vmem [shape: f32[1,64], index: 4, kind: input, shape index: {}]   ;;  %s527_s5 = inlined_call_operand.vmem [shape: f32[1,64], index: 5, kind: input, shape index: {}]   ;;  %s528_s6 = inlined_call_operand.<no memory space> [shape: f32[1,1], index: 6, kind: input, shape index: {}]   ;;  %s529_s7 = inlined_call_operand.hbm [shape: f32[1,1,8], index: 7, kind: output, shape index: {}]  }
   0x1   :  { %v12_v0 = vstv %s528_s6 }
   0x2   :  { %13 = vst [vmem:[#allocation2] sm:$0x1] %v12_v0 }
   0x3   :  { %v384_v1 = vld [vmem:[%s523_s1] sm:$0xff]   ;;  %v418_v2 = vmov 0.0   ;;  %v385_v3 = vld [vmem:[%s523_s1 + $0x8] sm:$0xff]   ;;  %vm419_vm0 = vmmov 0   ;;  %vm55_vm1 = vcmask 261120   ;;  %v388_v8 = vld [vmem:[%s525_s3 + $0x10] sm:$0xff]  }
   0x4   :  { %346 = vmatprep.subr.bf16.mxu0 %v418_v2  ;;  %354 = vmatprep.subr.bf16.mxu1 %v418_v2  ;;  %v30_v4 = vld [vmem:[%s522_s0] sm:$0xff]  ;;  %v387_v7 = vld [vmem:[%s525_s3 + $0x8] sm:$0xff]  }
   0x5   :  { %347 = vmatpush3.bf16.msra.mxu0 %v384_v1  ;;  %350 = vmatprep.mubr.msk.bf16.mxu0 %vm419_vm0, %v418_v2  ;;  %v386_v5 = vld [vmem:[%s525_s3] sm:$0xff]   ;;  %v31_v6 = vpack.c.bf16 %v30_v4, %v30_v4 }
   0x6   :  { %348 = vmatprep.subr.bf16.mxu0 %v418_v2  ;;  %370 = vmatprep.mubr.msk.bf16.mxu1 %vm419_vm0, %v418_v2 }
   0x7   :  { %355 = vmatpush3.bf16.msra.mxu1 %v386_v5 }
   0x8   :  { %356 = vmatprep.subr.bf16.mxu1 %v418_v2 }
   0x9   :  { %349 = vmatpush3.bf16.msra.mxu0 %v385_v3 }
   0xa   :  { %374 = vmatprep.subr.mxu0 %v418_v2 }
   0xb   :  { %357 = vmatpush3.bf16.msra.mxu1 %v387_v7 }
   0xc   :  { %351 = vmatmul.mubr.msk.bf16.vlgmr.msra.gmra.mrb[0].mxu0 %vm55_vm1, %v31_v6  ;;  %358 = vmatprep.subr.bf16.mxu1 %v418_v2 }
   0xd   :  { %376 = vmatprep.mubr.msk.f32.mxu0 %vm419_vm0, %v418_v2 }
   0xe   :  { %14 = vsyncpa [#allocation4], 0  ;;  %v389_v9 = vld [vmem:[%s525_s3 + $0x18] sm:$0xff]   ;;  %v390_v10 = vld [vmem:[%s525_s3 + $0x20] sm:$0xff]   ;;  %v420_v23 = vmov 0   ;;  %vm224_vm2 = vcmask 523264   ;;  %v220_v32 = vlaneseq }
   0xf   :  { %359 = vmatpush3.bf16.msra.mxu1 %v388_v8  ;;  %v391_v11 = vld [vmem:[%s525_s3 + $0x28] sm:$0xff]   ;;  %v392_v12 = vld [vmem:[%s525_s3 + $0x30] sm:$0xff]   ;;  %v393_v13 = vld [vmem:[%s525_s3 + $0x38] sm:$0xff]   ;;  %383 = vset.pattern.permute.xlu0 %v420_v23  ;;  %s421_s26 = smov [#allocation3]   ;;  %vm301_vm3 = vcmask 57344  }
  0x10   :  { %360 = vmatprep.subr.bf16.mxu1 %v418_v2  ;;  %v317_v14 = vld [vmem:[%s524_s2] ss:$0 sm:$0xff]  ;;  %v221_v33 = vshrl.u32 %v220_v32, 7 }
  0x11   :  { %v214_v22 = vld [vmem:[#allocation2] sm:$0x1] }
  0x12   :  { %217 = vperm.xlu0 %383, %v214_v22   ;;  %v321_v24 = vld [vmem:[%s526_s4] ss:$0 sm:$0xff]  ;;  %v222_v34 = vsub.s32 0, %v221_v33  ;;  %s309_s4 = sshll.u32 %s421_s26, 4  ;;  %s310_s4 = int_to_ptr.vmem [resolvable:$true] %s309_s4 }
  0x13   :  { %361 = vmatpush3.bf16.msra.mxu1 %v389_v9  ;;  %v213_v31 = vld [vmem:[%s527_s5] sm:$0x1]  ;;  %s394_s27 = scalar_lea.vmem %s310_s4, 16  ;;  %s398_s28 = scalar_lea.vmem %s310_s4, 32 }
  0x14   :  { %362 = vmatprep.subr.bf16.mxu1 %v418_v2  ;;  %p395_p0 = scmp.ne.s32.totalorder %s310_s4, %s394_s27  ;;  %p399_p1 = scmp.lt.s32.totalorder %s310_s4, %s310_s4 }
  0x15   :  { %p400_p2 = scmp.lt.s32.totalorder %s398_s28, %s394_s27 }
  0x17   :  { %363 = vmatpush3.bf16.msra.mxu1 %v390_v10  ;;  %p401_p3 = por %p400_p2, %p399_p1 }
  0x18   :  { %364 = vmatprep.subr.bf16.mxu1 %v418_v2 }
  0x19   :  { %p402_p4 = pnand %p401_p3, %p395_p0 }
  0x1b   :  { %365 = vmatpush3.bf16.msra.mxu1 %v391_v11 }
  0x1c   :  { %366 = vmatprep.subr.bf16.mxu1 %v418_v2 }
  0x1f   :  { %367 = vmatpush3.bf16.msra.mxu1 %v392_v12 }
  0x20   :  { %368 = vmatprep.subr.bf16.mxu1 %v418_v2 }
  0x23   :  { %369 = vmatpush3.bf16.msra.mxu1 %v393_v13 }
  0x91   :  { %v218_v35 = vpop.permute.xlu0 %217 }
  0x92   :  { %v223_v36 = vrot.slane %v218_v35, %v222_v34 }
  0xdf   :  { %v93_v15 = vpop.f32.mrb[0].mxu0 }
  0xe0   :  { %v94_v16 = vadd.f32 %v317_v14, %v93_v15  ;;  %v352_v17 = vpop.f32.mrb[1].mxu0 }
  0xe1   :  { %v96_v18 = vpop.f32.mrb[2].mxu0 }
  0xe2   :  { %v99_v19 = vmax.f32 %v94_v16, 0.0  ;;  %v353_v20 = vpop.f32.mrb[3].mxu0 }
  0xe4   :  { %v100_v21 = vpack.c.bf16 %v99_v19, %v99_v19 }
  0xe6   :  { %371 = vmatmul.mubr.bf16.vlgmr.msra.gmra.mrb[0].mxu1 %v100_v21 }
 0x1b9   :  { %v206_v25 = vpop.f32.mrb[0].mxu1 }
 0x1ba   :  { %v207_v26 = vadd.f32 %v321_v24, %v206_v25  ;;  %v372_v27 = vpop.f32.mrb[1].mxu1 }
 0x1bb   :  { %v209_v28 = vpop.f32.mrb[2].mxu1 }
 0x1bc   :  { %v212_v29 = vmax.f32 %v207_v26, 0.0  ;;  %v373_v30 = vpop.f32.mrb[3].mxu1 }
 0x1be   :  { %375 = vmatpush3.xpose.msk.msra.mxu0 %vm224_vm2, %v212_v29 }
 0x1c1   :  { %377 = vmatmul.mubr.msk.f32.vlgmr.msra.gmra.mrb[4].mxu0 %vm224_vm2, %v213_v31 }
 0x294   :  { %v297_v37 = vpop.f32.mrb[4].mxu0 }
 0x295   :  { %v298_v38 = vadd.f32 %v297_v37, %v223_v36  ;;  %v378_v39 = vpop.f32.mrb[5].mxu0 }
 0x297   :  { %302 = vst.msk [vmem:[#allocation3] sm:$0x1] %vm301_vm3, %v298_v38 }
 0x298   :  { %405 = shalt.err (!%p402_p4)
}
 0x299   :  { %s406_s30 = scalar_lea.hbm %s529_s7, 16 }
 0x29a   :  { %p407_p5 = scmp.ne.s32.totalorder %s529_s7, %s406_s30  ;;  %p410_p6 = scmp.lt.u32.totalorder %s406_s30, %s529_s7 }
 0x29c   :  { %p412_p7 = pnand %p410_p6, %p407_p5 }
 0x29e   :  { %415 = shalt.err (!%p412_p7)
}
 0x29f   :  { %312 = dma.vmem_to_hbm [thread:$0]  %s310_s4, 16, %s529_s7, [#allocation4]  }
 0x2a0   :  { %416 = dma.done.wait [#allocation4], 16  }
 0x2a1   :  { %417 = vsyncadd [#allocation4], 4294967280 }
 0x2a2   :  { %316 = vsyncpa [#allocation4], 1 }

</bundles_post_ra>
